<compile_context>
chip_gen: v7x
topology: tpu7x:2x2x1
jax: 0.10.0
libtpu: 0.0.40
codegen_flags: <defaults>
</compile_context>

<pallas_src>
import jax
import jax.numpy as jnp
from jax.experimental import pallas as pl
from jax.experimental.pallas import tpu as pltpu  # noqa: F401  (TPU backend)


def pulse_embed_kernel(x_ref, w_ref, add_ref, out_ref):
    # x_ref:   (B*P, F)  flattened pulses
    # w_ref:   (F, E)    projection weight (transposed vs torch's (E, F))
    # add_ref: (B*P, E)  precomputed bias + pos_emb[1:] (tiled over batch)
    # out_ref: (B*P, E)  projected pulses with bias + positional embedding
    out_ref[...] = (
        jnp.dot(x_ref[...], w_ref[...], preferred_element_type=jnp.float32)
        + add_ref[...]
    ).astype(out_ref.dtype)


def pulse_embedding_layer(x, w, b, pos_emb, class_param):
    """Full forward of PulseEmbeddingLayer: x (B, P, F) -> (B, P+1, E)."""
    B, P, F = x.shape
    E = w.shape[1]
    BP = B * P

    # Flatten batch into the matmul M dimension (single large MXU pass).
    x2d = x.reshape(BP, F)
    # Fold Linear bias and positional embeddings for pulse rows into one tile.
    addend = jnp.tile(pos_emb[1:] + b[None, :], (B, 1))          # (B*P, E)

    proj = pl.pallas_call(
        pulse_embed_kernel,
        out_shape=jax.ShapeDtypeStruct((BP, E), jnp.float32),
        grid=(1,),
        in_specs=[
            pl.BlockSpec((BP, F), lambda i: (0, 0)),             # x (whole)
            pl.BlockSpec((F, E), lambda i: (0, 0)),              # weight
            pl.BlockSpec((BP, E), lambda i: (0, 0)),             # bias + pos
        ],
        out_specs=pl.BlockSpec((BP, E), lambda i: (0, 0)),
    )(x2d, w, addend)

    proj = proj.reshape(B, P, E)
    # Class-token row (position 0): tiny batch-only add, hoisted to the
    # wrapper so the kernel output stays sublane/lane aligned (P=8 rows).
    cls_rows = class_param + pos_emb[0][None, None, :]           # (B, 1, E)
    return jnp.concatenate([cls_rows, proj], axis=1)             # (B, P+1, E)


def reference(x, w, b, pos_emb, class_param):
    proj = jnp.einsum("bpf,fe->bpe", x, w) + b                   # Linear
    cls = jnp.broadcast_to(class_param, (x.shape[0], 1, w.shape[1]))
    enc = jnp.concatenate([cls, proj], axis=1)                   # cat class token
    return enc + pos_emb[None, :, :]                             # + position_emb


if __name__ == "__main__":
    # Small shapes consistent with the module's forward.
    batch_size = 2
    num_pulses = 8
    num_features = 16
    embed_dim = 32

    key = jax.random.PRNGKey(0)
    k_x, k_w, k_b, k_pos, k_cls = jax.random.split(key, 5)

    # Input: (batch, num_pulses, num_features)
    x = jax.random.normal(k_x, (batch_size, num_pulses, num_features), dtype=jnp.float32)

    # Synthetic parameters (shapes from __init__):
    #   projection_layer: Linear(num_features -> embed_dim)  -> weight stored as (F, E)
    #   position_emb:     Embedding(num_pulses + 1, embed_dim)
    #   class_parameter:  (batch_size, 1, embed_dim)
    w = jax.random.normal(k_w, (num_features, embed_dim), dtype=jnp.float32) * 0.1
    b = jax.random.normal(k_b, (embed_dim,), dtype=jnp.float32) * 0.1
    pos_emb = jax.random.normal(k_pos, (num_pulses + 1, embed_dim), dtype=jnp.float32)
    class_param = jax.random.uniform(k_cls, (batch_size, 1, embed_dim), dtype=jnp.float32)

    out = pulse_embedding_layer(x, w, b, pos_emb, class_param)
    out = jax.block_until_ready(out)

    ref = reference(x, w, b, pos_emb, class_param)
    assert out.shape == (batch_size, num_pulses + 1, embed_dim)
    assert jnp.allclose(out, ref, atol=1e-5, rtol=1e-5), "mismatch vs reference"

    print("KERNEL_OK")
</pallas_src>

<mosaic_0001>
module attributes {stable_mosaic.version = 11 : i64} {
  func.func @pulse_embed_kernel(%arg0: i32, %arg1: memref<16x16xf32, #tpu.memory_space<vmem>>, %arg2: memref<16x32xf32, #tpu.memory_space<vmem>>, %arg3: memref<16x32xf32, #tpu.memory_space<vmem>>, %arg4: memref<16x32xf32, #tpu.memory_space<vmem>>) attributes {dimension_semantics = [#tpu.dimension_semantics<arbitrary>], iteration_bounds = array<i64: 1>, scalar_prefetch = 0 : i64, scratch_operands = 0 : i64, tpu.core_type = #tpu.core_type<tc>, window_params = [{pipeline_mode = #tpu.pipeline_mode<synchronous>, transform_indices = @transform_0, window_bounds = array<i64: 16, 16>}, {pipeline_mode = #tpu.pipeline_mode<synchronous>, transform_indices = @transform_1, window_bounds = array<i64: 16, 32>}, {pipeline_mode = #tpu.pipeline_mode<synchronous>, transform_indices = @transform_2, window_bounds = array<i64: 16, 32>}, {pipeline_mode = #tpu.pipeline_mode<synchronous>, transform_indices = @transform_3, window_bounds = array<i64: 16, 32>}]} {
    %c0 = arith.constant 0 : index
    %c0_0 = arith.constant 0 : index
    %0 = vector.load %arg1[%c0, %c0_0] : memref<16x16xf32, #tpu.memory_space<vmem>>, vector<16x16xf32>
    %c0_1 = arith.constant 0 : index
    %c0_2 = arith.constant 0 : index
    %1 = vector.load %arg2[%c0_1, %c0_2] : memref<16x32xf32, #tpu.memory_space<vmem>>, vector<16x32xf32>
    %cst = arith.constant dense<0.000000e+00> : vector<16x32xf32>
    %2 = tpu.matmul %0, %1, %cst {dimension_numbers = #tpu.dot_dimension_numbers<[1], [0], [0], [1], [0, 0, 1, 1], [], []>} : vector<16x16xf32>, vector<16x32xf32>, vector<16x32xf32> -> vector<16x32xf32>
    %c0_3 = arith.constant 0 : index
    %c0_4 = arith.constant 0 : index
    %3 = vector.load %arg3[%c0_3, %c0_4] : memref<16x32xf32, #tpu.memory_space<vmem>>, vector<16x32xf32>
    %4 = arith.addf %2, %3 : vector<16x32xf32>
    %c0_5 = arith.constant 0 : index
    %c0_6 = arith.constant 0 : index
    %5 = vector.load %arg4[%c0_5, %c0_6] : memref<16x32xf32, #tpu.memory_space<vmem>>, vector<16x32xf32>
    tpu.vector_store %arg4[%c0_5, %c0_6], %4 {strides = array<i32>} : memref<16x32xf32, #tpu.memory_space<vmem>>, vector<16x32xf32>,
    return
  }
  func.func @transform_0(%arg0: i32) -> (i32, i32) {
    %c0_i32 = arith.constant 0 : i32
    %c0_i32_0 = arith.constant 0 : i32
    %c0_i32_1 = arith.constant 0 : i32
    return %c0_i32, %c0_i32_0 : i32, i32
  }
  func.func @transform_1(%arg0: i32) -> (i32, i32) {
    %c0_i32 = arith.constant 0 : i32
    %c0_i32_0 = arith.constant 0 : i32
    %c0_i32_1 = arith.constant 0 : i32
    return %c0_i32, %c0_i32_0 : i32, i32
  }
  func.func @transform_2(%arg0: i32) -> (i32, i32) {
    %c0_i32 = arith.constant 0 : i32
    %c0_i32_0 = arith.constant 0 : i32
    %c0_i32_1 = arith.constant 0 : i32
    return %c0_i32, %c0_i32_0 : i32, i32
  }
  func.func @transform_3(%arg0: i32) -> (i32, i32) {
    %c0_i32 = arith.constant 0 : i32
    %c0_i32_0 = arith.constant 0 : i32
    %c0_i32_1 = arith.constant 0 : i32
    return %c0_i32, %c0_i32_0 : i32, i32
  }
}

</mosaic_0001>

<bundles_post_ra>
// kernel: tpu_custom_call.1
= control target key start
LH: loop header
LB: loop body
LE: loop exit
PB: predicated region body
PF: predicated region fallthrough
CT: control target
= control target key end

     0   :  { %8 = vsyncpa [#allocation3], 0  ;;  %s375_s0 = inlined_call_operand.hbm [shape: f32[16,16], index: 0, kind: input, shape index: {}]   ;;  %s376_s1 = inlined_call_operand.hbm [shape: f32[16,32], index: 1, kind: input, shape index: {}]   ;;  %s377_s2 = inlined_call_operand.hbm [shape: f32[16,32], index: 2, kind: input, shape index: {}]   ;;  %s378_s3 = inlined_call_operand.hbm [shape: f32[16,32], index: 3, kind: output, shape index: {}]  }
   0x1   :  { %9 = vsyncpa [#allocation6], 0 }
   0x2   :  { %10 = vsyncpa [#allocation4], 0  ;;  %s282_s12 = smov [#allocation5]   ;;  %s283_s14 = smov [#allocation2]  }
   0x3   :  { %s28_s13 = sshll.u32 %s282_s12, 4  ;;  %s16_s15 = sshll.u32 %s283_s14, 4  ;;  %s29_s13 = int_to_ptr.vmem [resolvable:$true] %s28_s13  ;;  %s308_s15 = int_to_ptr.vmem [resolvable:$true] %s16_s15 }
   0x4   :  { %s188_s18 = scalar_lea.hbm %s376_s1, 256 }
   0x5   :  { %p189_p0 = scmp.ne.s32.totalorder %s376_s1, %s188_s18  ;;  %p192_p1 = scmp.lt.u32.totalorder %s188_s18, %s376_s1 }
   0x7   :  { %p194_p2 = pnand %p192_p1, %p189_p0 }
   0x9   :  { %197 = shalt.err (!%p194_p2)
}
   0xa   :  { %s198_s23 = scalar_lea.vmem %s29_s13, 256  ;;  %p203_p4 = scmp.lt.s32.totalorder %s29_s13, %s29_s13 }
   0xb   :  { %p199_p3 = scmp.ne.s32.totalorder %s29_s13, %s198_s23  ;;  %p204_p5 = scmp.lt.s32.totalorder %s198_s23, %s198_s23 }
   0xd   :  { %p205_p6 = por %p204_p5, %p203_p4 }
   0xf   :  { %p206_p7 = pnand %p205_p6, %p199_p3 }
  0x11   :  { %209 = shalt.err (!%p206_p7)
}
  0x12   :  { %s284_s24 = smov 128   ;;  %s285_s25 = smov 8  }
  0x13   :  { %34 = dma.hbm_to_vmem [thread:$0]  %s376_s1, 256, %s29_s13, [#allocation6], %s284_s24, %s284_s24, %s285_s25  }
  0x14   :  { %s210_s30 = scalar_lea.hbm %s375_s0, 256 }
  0x15   :  { %p211_p8 = scmp.ne.s32.totalorder %s375_s0, %s210_s30  ;;  %p214_p9 = scmp.lt.u32.totalorder %s210_s30, %s375_s0 }
  0x17   :  { %p216_p10 = pnand %p214_p9, %p211_p8 }
  0x19   :  { %219 = shalt.err (!%p216_p10)
}
  0x1a   :  { %s220_s8 = scalar_lea.vmem %s308_s15, 256  ;;  %p225_p12 = scmp.lt.s32.totalorder %s308_s15, %s308_s15 }
  0x1b   :  { %p221_p11 = scmp.ne.s32.totalorder %s308_s15, %s220_s8  ;;  %p226_p13 = scmp.lt.s32.totalorder %s220_s8, %s220_s8 }
  0x1d   :  { %p227_p0 = por %p226_p13, %p225_p12 }
  0x1f   :  { %p228_p1 = pnand %p227_p0, %p221_p11 }
  0x21   :  { %231 = shalt.err (!%p228_p1)
}
  0x22   :  { %22 = dma.hbm_to_vmem [thread:$0]  %s375_s0, 256, %s308_s15, [#allocation3], %s284_s24, %s284_s24, %s285_s25  }
  0x23   :  { %s286_s10 = smov [#allocation7]   ;;  %s232_s14 = scalar_lea.hbm %s377_s2, 256 }
  0x24   :  { %s40_s11 = sshll.u32 %s286_s10, 4  ;;  %p233_p2 = scmp.ne.s32.totalorder %s377_s2, %s232_s14  ;;  %s41_s11 = int_to_ptr.vmem [resolvable:$true] %s40_s11 }
  0x25   :  { %p236_p3 = scmp.lt.u32.totalorder %s232_s14, %s377_s2 }
  0x27   :  { %p238_p4 = pnand %p236_p3, %p233_p2 }
  0x29   :  { %241 = shalt.err (!%p238_p4)
}
  0x2a   :  { %s242_s20 = scalar_lea.vmem %s41_s11, 256  ;;  %p247_p6 = scmp.lt.s32.totalorder %s41_s11, %s41_s11 }
  0x2b   :  { %p243_p5 = scmp.ne.s32.totalorder %s41_s11, %s242_s20  ;;  %p248_p7 = scmp.lt.s32.totalorder %s242_s20, %s242_s20 }
  0x2d   :  { %p249_p8 = por %p248_p7, %p247_p6 }
  0x2f   :  { %p250_p9 = pnand %p249_p8, %p243_p5 }
  0x31   :  { %253 = shalt.err (!%p250_p9)
}
  0x32   :  { %46 = dma.hbm_to_vmem [thread:$0]  %s377_s2, 256, %s41_s11, [#allocation6], %s284_s24, %s284_s24, %s285_s25  }
  0x33   :  { %276 = dma.done.wait [#allocation3], 256  }
  0x34   :  { %277 = vsyncadd [#allocation3], 4294967040 }
  0x35   :  { %278 = dma.done.wait [#allocation6], 512  }
  0x36   :  { %279 = vsyncadd [#allocation6], 4294966784  ;;  %vm62_vm0 = vcmask 130048   ;;  %v58_v0 = vld [vmem:[#allocation5] sm:$0xff]  ;;  %v59_v1 = vld [vmem:[#allocation5 + $0x8] sm:$0xff]  ;;  %s287_s21 = smov [#allocation8]  }
  0x37   :  { %v56_v2 = vld [vmem:[#allocation2] sm:$0xff]  ;;  %v178_v3 = vpack.c.bf16 %v59_v1, %v58_v0  ;;  %v57_v4 = vld [vmem:[#allocation2 + $0x8] sm:$0xff]  ;;  %s152_s22 = sshll.u32 %s287_s21, 4  ;;  %vm144_vm1 = vcmask 261120   ;;  %s153_s22 = int_to_ptr.vmem [resolvable:$true] %s152_s22 }
  0x38   :  { %175 = vmatprep.mubr.msk.f32.mxu0 %vm62_vm0, %v56_v2  ;;  %v61_v5 = vld [vmem:[#allocation7 + $0x8] sm:$0xff]  ;;  %v60_v6 = vld [vmem:[#allocation7] sm:$0xff]  ;;  %s254_s2 = scalar_lea.vmem %s153_s22, 256  ;;  %p259_p11 = scmp.lt.s32.totalorder %s153_s22, %s153_s22 }
  0x39   :  { %179 = vmatprep.subr.bf16.mxu0 %v178_v3  ;;  %p255_p10 = scmp.ne.s32.totalorder %s153_s22, %s254_s2  ;;  %p260_p12 = scmp.lt.s32.totalorder %s254_s2, %s254_s2 }
  0x3a   :  { %181 = vmatpush3.bf16.msra.mxu0 %v178_v3 }
  0x3b   :  { %p261_p13 = por %p260_p12, %p259_p11 }
  0x3d   :  { %176 = vmatmul.mubr.msk.f32.vlgmr.msra.gmra.mrb[0].mxu0 %vm62_vm0, %v57_v4  ;;  %p262_p0 = pnand %p261_p13, %p255_p10 }
 0x110   :  { %v177_v7 = vpop.f32.mrb[0].mxu0 }
 0x111   :  { %v141_v8 = vadd.f32 %v177_v7, %v61_v5  ;;  %v135_v9 = vpop.f32.mrb[1].mxu0 }
 0x112   :  { %v136_v10 = vadd.f32 %v135_v9, %v60_v6 }
 0x113   :  { %146 = vst.msk [vmem:[#allocation8 + $0x8] sm:$0xff] %vm144_vm1, %v141_v8 }
 0x114   :  { %145 = vst.msk [vmem:[#allocation8] sm:$0xff] %vm144_vm1, %v136_v10 }
 0x115   :  { %265 = shalt.err (!%p262_p0)
}
 0x116   :  { %s266_s27 = scalar_lea.hbm %s378_s3, 256 }
 0x117   :  { %p267_p1 = scmp.ne.s32.totalorder %s378_s3, %s266_s27  ;;  %p270_p2 = scmp.lt.u32.totalorder %s266_s27, %s378_s3 }
 0x119   :  { %p272_p3 = pnand %p270_p2, %p267_p1 }
 0x11b   :  { %275 = shalt.err (!%p272_p3)
}
 0x11c   :  { %158 = dma.vmem_to_hbm [thread:$0]  %s153_s22, 256, %s378_s3, [#allocation4], %s284_s24, %s284_s24, %s285_s25  }
 0x11d   :  { %280 = dma.done.wait [#allocation4], 256  }
 0x11e   :  { %281 = vsyncadd [#allocation4], 4294967040 }
 0x11f   :  { %162 = vsyncpa [#allocation3], 1 }
 0x120   :  { %163 = vsyncpa [#allocation6], 1 }
 0x121   :  { %164 = vsyncpa [#allocation4], 1 }

</bundles_post_ra>
